<compile_context>
chip_gen: v6e
topology: v6e:2x2x1
jax: 0.10.0
libtpu: 0.0.40
codegen_flags: <defaults>
</compile_context>

<pallas_src>
import math

import jax
import jax.numpy as jnp
from jax.experimental import pallas as pl
from jax.experimental.pallas import tpu as pltpu

N_BLOCK = 10
N_CONV_EACH_BLOCK = 2
N_MODULATION = N_BLOCK * N_CONV_EACH_BLOCK          # 20
CONDITION_CHANNEL = 128                              # conv_index == '22'
SR_IN_CHANNEL = 64
TOTAL_OUT = N_MODULATION * SR_IN_CHANNEL             # 1280 (10 x 128 lanes)
LR_MUL = 1.0
SCALE = 1.0 / math.sqrt(CONDITION_CHANNEL) * LR_MUL


def _modulations_kernel(x_ref, w_ref, b_ref, o_ref):
    # x_ref: (T_pad, 128)   w_ref: (128, 1280)   b_ref: (1, 1280)
    # o_ref: (T_pad, 1280)  -- lane-dense, unmasked stores
    y = jnp.dot(x_ref[...], w_ref[...], preferred_element_type=jnp.float32)
    o_ref[...] = (y + b_ref[...]).astype(o_ref.dtype)


def _pack_params(weights, biases):
    """weights: [20, 64, 128], biases: [20, 64] ->
       W_packed: [128, 1280] (scale folded in, K on RHS sublanes),
       b_packed: [1, 1280]   (lr_mul folded in)."""
    w_packed = (weights * SCALE).reshape(TOTAL_OUT, CONDITION_CHANNEL).T
    b_packed = (biases * LR_MUL).reshape(1, TOTAL_OUT)
    return w_packed, b_packed


def modulations_forward(condition_feature, weights, biases):
    """condition_feature: [task_size, 128, 1, 1] (NCHW, h = w = 1)
       weights: [20, 64, 128], biases: [20, 64]
       returns: [10, 2, task_size, 1, 64, 1, 1, 1]"""
    task_size, cc, h, w = condition_feature.shape
    if cc != CONDITION_CHANNEL:
        raise ValueError(
            "the shape of input condition_feature should be "
            "[task_size, condition_channel, h, w]")

    # permute(0,2,3,1).view(T, -1) with h = w = 1  ->  (T, 128)
    x = condition_feature.reshape(task_size, CONDITION_CHANNEL)

    # Pad task dim to a multiple of 8 sublanes (f32 (8,128) vreg tile).
    t_pad = max(8, ((task_size + 7) // 8) * 8)
    if t_pad != task_size:
        x = jnp.pad(x, ((0, t_pad - task_size), (0, 0)))

    w_packed, b_packed = _pack_params(weights, biases)

    bytes_accessed = 4 * (t_pad * CONDITION_CHANNEL
                          + CONDITION_CHANNEL * TOTAL_OUT
                          + TOTAL_OUT
                          + t_pad * TOTAL_OUT)

    out = pl.pallas_call(
        _modulations_kernel,
        out_shape=jax.ShapeDtypeStruct((t_pad, TOTAL_OUT), x.dtype),
        grid=(1,),
        in_specs=[
            pl.BlockSpec((t_pad, CONDITION_CHANNEL), lambda i: (0, 0)),
            pl.BlockSpec((CONDITION_CHANNEL, TOTAL_OUT), lambda i: (0, 0)),
            pl.BlockSpec((1, TOTAL_OUT), lambda i: (0, 0)),
        ],
        out_specs=pl.BlockSpec((t_pad, TOTAL_OUT), lambda i: (0, 0)),
        compiler_params=pltpu.CompilerParams(
            dimension_semantics=("arbitrary",),
            vmem_limit_bytes=8 * 1024 * 1024,
        ),
        cost_estimate=pl.CostEstimate(
            flops=2 * t_pad * CONDITION_CHANNEL * TOTAL_OUT,
            transcendentals=0,
            bytes_accessed=bytes_accessed,
        ),
    )(x, w_packed, b_packed)

    # (T_pad, 1280) -> (T, 20, 64) -> (20, T, 64) -> (10, 2, T, 1, 64, 1, 1, 1)
    out = out[:task_size].reshape(task_size, N_MODULATION, SR_IN_CHANNEL)
    out = jnp.transpose(out, (1, 0, 2))
    return out.reshape(
        N_BLOCK, N_CONV_EACH_BLOCK, task_size, 1, SR_IN_CHANNEL, 1, 1, 1)


def _reference_forward(condition_feature, weights, biases):
    task_size = condition_feature.shape[0]
    x = condition_feature.reshape(task_size, CONDITION_CHANNEL)
    # (20, T, 64)
    y = jnp.einsum("tc,moc->mto", x, weights) * SCALE + biases[:, None, :] * LR_MUL
    return y.reshape(
        N_BLOCK, N_CONV_EACH_BLOCK, task_size, 1, SR_IN_CHANNEL, 1, 1, 1)


if __name__ == "__main__":
    key = jax.random.PRNGKey(0)
    k_w, k_x = jax.random.split(key)

    # Deterministic parameter init mirroring EqualLinear.__init__:
    #   weight ~ randn(out_dim, in_dim) / lr_mul ; bias = ones * bias_init(=1)
    weights = jax.random.normal(
        k_w, (N_MODULATION, SR_IN_CHANNEL, CONDITION_CHANNEL), dtype=jnp.float32)
    biases = jnp.ones((N_MODULATION, SR_IN_CHANNEL), dtype=jnp.float32)

    task_size = 2
    condition_feature = jax.random.normal(
        k_x, (task_size, CONDITION_CHANNEL, 1, 1), dtype=jnp.float32)

    out = modulations_forward(condition_feature, weights, biases)
    out = jax.block_until_ready(out)

    expected_shape = (N_BLOCK, N_CONV_EACH_BLOCK, task_size, 1, SR_IN_CHANNEL, 1, 1, 1)
    assert out.shape == expected_shape, out.shape

    ref = _reference_forward(condition_feature, weights, biases)
    assert jnp.allclose(out, ref, atol=1e-5, rtol=1e-5), "mismatch vs reference"

    print("KERNEL_OK")
</pallas_src>

<mosaic_0001>
module attributes {stable_mosaic.version = 11 : i64} {
  func.func @_modulations_kernel(%arg0: i32, %arg1: memref<8x128xf32, #tpu.memory_space<vmem>>, %arg2: memref<128x1280xf32, #tpu.memory_space<vmem>>, %arg3: memref<1x1280xf32, #tpu.memory_space<vmem>>, %arg4: memref<8x1280xf32, #tpu.memory_space<vmem>>) attributes {dimension_semantics = [#tpu.dimension_semantics<arbitrary>], iteration_bounds = array<i64: 1>, scalar_prefetch = 0 : i64, scratch_operands = 0 : i64, tpu.core_type = #tpu.core_type<tc>, window_params = [{pipeline_mode = #tpu.pipeline_mode<synchronous>, transform_indices = @transform_0, window_bounds = array<i64: 8, 128>}, {pipeline_mode = #tpu.pipeline_mode<synchronous>, transform_indices = @transform_1, window_bounds = array<i64: 128, 1280>}, {pipeline_mode = #tpu.pipeline_mode<synchronous>, transform_indices = @transform_2, window_bounds = array<i64: 1, 1280>}, {pipeline_mode = #tpu.pipeline_mode<synchronous>, transform_indices = @transform_3, window_bounds = array<i64: 8, 1280>}]} {
    %c0 = arith.constant 0 : index
    %c0_0 = arith.constant 0 : index
    %0 = vector.load %arg1[%c0, %c0_0] : memref<8x128xf32, #tpu.memory_space<vmem>>, vector<8x128xf32>
    %c0_1 = arith.constant 0 : index
    %c0_2 = arith.constant 0 : index
    %1 = vector.load %arg2[%c0_1, %c0_2] : memref<128x1280xf32, #tpu.memory_space<vmem>>, vector<128x1280xf32>
    %cst = arith.constant dense<0.000000e+00> : vector<8x1280xf32>
    %2 = tpu.matmul %0, %1, %cst {dimension_numbers = #tpu.dot_dimension_numbers<[1], [0], [0], [1], [0, 0, 1, 1], [], []>} : vector<8x128xf32>, vector<128x1280xf32>, vector<8x1280xf32> -> vector<8x1280xf32>
    %c0_3 = arith.constant 0 : index
    %c0_4 = arith.constant 0 : index
    %3 = vector.load %arg3[%c0_3, %c0_4] : memref<1x1280xf32, #tpu.memory_space<vmem>>, vector<1x1280xf32>
    %4 = vector.broadcast %3 : vector<1x1280xf32> to vector<8x1280xf32>
    %5 = arith.addf %2, %4 : vector<8x1280xf32>
    %c0_5 = arith.constant 0 : index
    %c0_6 = arith.constant 0 : index
    %6 = vector.load %arg4[%c0_5, %c0_6] : memref<8x1280xf32, #tpu.memory_space<vmem>>, vector<8x1280xf32>
    tpu.vector_store %arg4[%c0_5, %c0_6], %5 {strides = array<i32>} : memref<8x1280xf32, #tpu.memory_space<vmem>>, vector<8x1280xf32>,
    return
  }
  func.func @transform_0(%arg0: i32) -> (i32, i32) {
    %c0_i32 = arith.constant 0 : i32
    %c0_i32_0 = arith.constant 0 : i32
    %c0_i32_1 = arith.constant 0 : i32
    return %c0_i32, %c0_i32_0 : i32, i32
  }
  func.func @transform_1(%arg0: i32) -> (i32, i32) {
    %c0_i32 = arith.constant 0 : i32
    %c0_i32_0 = arith.constant 0 : i32
    %c0_i32_1 = arith.constant 0 : i32
    return %c0_i32, %c0_i32_0 : i32, i32
  }
  func.func @transform_2(%arg0: i32) -> (i32, i32) {
    %c0_i32 = arith.constant 0 : i32
    %c0_i32_0 = arith.constant 0 : i32
    %c0_i32_1 = arith.constant 0 : i32
    return %c0_i32, %c0_i32_0 : i32, i32
  }
  func.func @transform_3(%arg0: i32) -> (i32, i32) {
    %c0_i32 = arith.constant 0 : i32
    %c0_i32_0 = arith.constant 0 : i32
    %c0_i32_1 = arith.constant 0 : i32
    return %c0_i32, %c0_i32_0 : i32, i32
  }
}

</mosaic_0001>

<bundles_post_ra>
// kernel: tpu_custom_call.1
= control target key start
LH: loop header
LB: loop body
LE: loop exit
PB: predicated region body
PF: predicated region fallthrough
CT: control target
= control target key end

     0   :  { %8 = vsyncpa [#allocation3], 0  ;;  %s792_s0 = inlined_call_operand.hbm [shape: f32[8,128], index: 0, kind: input, shape index: {}]   ;;  %s793_s1 = inlined_call_operand.hbm [shape: f32[128,1280], index: 1, kind: input, shape index: {}]   ;;  %s794_s2 = inlined_call_operand.hbm [shape: f32[1,1280], index: 2, kind: input, shape index: {}]   ;;  %s795_s3 = inlined_call_operand.hbm [shape: f32[8,1280], index: 3, kind: output, shape index: {}]  }
   0x1   :  { %9 = vsyncpa [#allocation6], 0 }
   0x2   :  { %10 = vsyncpa [#allocation4], 0  ;;  %s741_s12 = smov [#allocation5]  }
   0x3   :  { %s26_s13 = sshll.u32 %s741_s12, 4  ;;  %s27_s13 = int_to_ptr.vmem [resolvable:$true] %s26_s13 }
   0x4   :  { %s663_s14 = scalar_lea.vmem %s27_s13, 20480  ;;  %p668_p1 = scmp.lt.s32.totalorder %s27_s13, %s27_s13 }
   0x5   :  { %p664_p0 = scmp.ne.s32.totalorder %s27_s13, %s663_s14  ;;  %p669_p2 = scmp.lt.s32.totalorder %s663_s14, %s663_s14 }
   0x7   :  { %p670_p3 = por %p669_p2, %p668_p1 }
   0x9   :  { %p671_p4 = pnand %p670_p3, %p664_p0 }
   0xb   :  { %674 = shalt.err (!%p671_p4)
}
   0xc   :  { %s742_s15 = smov 1280   ;;  %s743_s16 = smov 80  }
   0xd   :  { %32 = dma.hbm_to_vmem [thread:$0]  %s793_s1, 20480, %s27_s13, [#allocation6], %s742_s15, %s742_s15, %s743_s16  }
   0xe   :  { %s744_s19 = smov [#allocation2]   ;;  %s745_s21 = smov [#allocation7]  }
   0xf   :  { %s17_s20 = sshll.u32 %s744_s19, 4  ;;  %s39_s22 = sshll.u32 %s745_s21, 4  ;;  %s18_s20 = int_to_ptr.vmem [resolvable:$true] %s17_s20  ;;  %s40_s22 = int_to_ptr.vmem [resolvable:$true] %s39_s22 }
  0x10   :  { %s683_s23 = scalar_lea.vmem %s18_s20, 128  ;;  %p688_p6 = scmp.lt.s32.totalorder %s18_s20, %s18_s20 }
  0x11   :  { %p684_p5 = scmp.ne.s32.totalorder %s18_s20, %s683_s23  ;;  %p689_p7 = scmp.lt.s32.totalorder %s683_s23, %s683_s23 }
  0x13   :  { %p690_p8 = por %p689_p7, %p688_p6 }
  0x15   :  { %p691_p9 = pnand %p690_p8, %p684_p5 }
  0x17   :  { %694 = shalt.err (!%p691_p9)
}
  0x18   :  { %20 = dma.hbm_to_vmem [thread:$0]  %s792_s0, 128, %s18_s20, [#allocation3]  }
  0x19   :  { %s703_s26 = scalar_lea.vmem %s40_s22, 160  ;;  %p708_p11 = scmp.lt.s32.totalorder %s40_s22, %s40_s22 }
  0x1a   :  { %p704_p10 = scmp.ne.s32.totalorder %s40_s22, %s703_s26  ;;  %p709_p12 = scmp.lt.s32.totalorder %s703_s26, %s703_s26 }
  0x1c   :  { %p710_p13 = por %p709_p12, %p708_p11 }
  0x1e   :  { %p711_p0 = pnand %p710_p13, %p704_p10 }
  0x20   :  { %714 = shalt.err (!%p711_p0)
}
  0x21   :  { %42 = dma.hbm_to_vmem [thread:$0]  %s794_s2, 160, %s40_s22, [#allocation6]  }
  0x22   :  { %735 = dma.done.wait [#allocation3], 128  }
  0x23   :  { %736 = vsyncadd [#allocation3], 4294967168 }
  0x24   :  { %737 = dma.done.wait [#allocation6], 20640  }
  0x25   :  { %738 = vsyncadd [#allocation6], 4294946656  ;;  %v746_v0 = vmov 0.0   ;;  %v204_v1 = vld [vmem:[#allocation5 + $0x4b8] sm:$0xff]  ;;  %v203_v2 = vld [vmem:[#allocation5 + $0x4b0] sm:$0xff]  ;;  %s747_s0 = smov [#allocation8]  }
  0x26   :  { %331 = vmatprep.mubr.f32.mxu0 %v746_v0  ;;  %402 = vmatprep.mubr.f32.mxu1 %v746_v0  ;;  %v194_v3 = vld [vmem:[#allocation5 + $0x468] sm:$0xff]  ;;  %v193_v4 = vld [vmem:[#allocation5 + $0x460] sm:$0xff]  ;;  %v184_v5 = vld [vmem:[#allocation5 + $0x418] sm:$0xff]  ;;  %s638_s2 = sshll.u32 %s747_s0, 4  ;;  %s639_s2 = int_to_ptr.vmem [resolvable:$true] %s638_s2 }
  0x27   :  { %267 = vmatprep.subr.mxu0 %v204_v1  ;;  %v183_v6 = vld [vmem:[#allocation5 + $0x410] sm:$0xff]  ;;  %v174_v7 = vld [vmem:[#allocation5 + $0x3c8] sm:$0xff]  ;;  %v173_v8 = vld [vmem:[#allocation5 + $0x3c0] sm:$0xff]  ;;  %s715_s28 = scalar_lea.vmem %s639_s2, 1280  ;;  %p720_p2 = scmp.lt.s32.totalorder %s639_s2, %s639_s2 }
  0x28   :  { %268 = vmatpush1.msra.mxu0 %v203_v2  ;;  %v164_v9 = vld [vmem:[#allocation5 + $0x378] sm:$0xff]  ;;  %v163_v10 = vld [vmem:[#allocation5 + $0x370] sm:$0xff]  ;;  %v154_v11 = vld [vmem:[#allocation5 + $0x328] sm:$0xff]  ;;  %p716_p1 = scmp.ne.s32.totalorder %s639_s2, %s715_s28  ;;  %p721_p3 = scmp.lt.s32.totalorder %s715_s28, %s715_s28 }
  0x29   :  { %269 = vmatprep.subr.mxu0 %v194_v3  ;;  %v153_v12 = vld [vmem:[#allocation5 + $0x320] sm:$0xff]  ;;  %v144_v13 = vld [vmem:[#allocation5 + $0x2d8] sm:$0xff]  ;;  %v206_v14 = vld [vmem:[#allocation5 + $0x4c8] sm:$0xff] }
  0x2a   :  { %270 = vmatpush1.msra.mxu0 %v193_v4  ;;  %v143_v15 = vld [vmem:[#allocation5 + $0x2d0] sm:$0xff]  ;;  %338 = vmatprep.subr.mxu1 %v206_v14  ;;  %v205_v16 = vld [vmem:[#allocation5 + $0x4c0] sm:$0xff]  ;;  %v196_v17 = vld [vmem:[#allocation5 + $0x478] sm:$0xff]  ;;  %p722_p4 = por %p721_p3, %p720_p2 }
  0x2b   :  { %271 = vmatprep.subr.mxu0 %v184_v5  ;;  %v134_v18 = vld [vmem:[#allocation5 + $0x288] sm:$0xff]  ;;  %339 = vmatpush1.msra.mxu1 %v205_v16  ;;  %v195_v19 = vld [vmem:[#allocation5 + $0x470] sm:$0xff]  ;;  %v133_v20 = vld [vmem:[#allocation5 + $0x280] sm:$0xff] }
  0x2c   :  { %272 = vmatpush1.msra.mxu0 %v183_v6  ;;  %340 = vmatprep.subr.mxu1 %v196_v17  ;;  %v186_v21 = vld [vmem:[#allocation5 + $0x428] sm:$0xff]  ;;  %v185_v22 = vld [vmem:[#allocation5 + $0x420] sm:$0xff]  ;;  %v124_v23 = vld [vmem:[#allocation5 + $0x238] sm:$0xff]  ;;  %p723_p5 = pnand %p722_p4, %p716_p1 }
  0x2d   :  { %273 = vmatprep.subr.mxu0 %v174_v7  ;;  %341 = vmatpush1.msra.mxu1 %v195_v19  ;;  %v176_v24 = vld [vmem:[#allocation5 + $0x3d8] sm:$0xff]  ;;  %v123_v25 = vld [vmem:[#allocation5 + $0x230] sm:$0xff]  ;;  %v114_v27 = vld [vmem:[#allocation5 + $0x1e8] sm:$0xff] }
  0x2e   :  { %274 = vmatpush1.msra.mxu0 %v173_v8  ;;  %342 = vmatprep.subr.mxu1 %v186_v21  ;;  %v175_v26 = vld [vmem:[#allocation5 + $0x3d0] sm:$0xff]  ;;  %v166_v28 = vld [vmem:[#allocation5 + $0x388] sm:$0xff]  ;;  %v113_v29 = vld [vmem:[#allocation5 + $0x1e0] sm:$0xff] }
  0x2f   :  { %275 = vmatprep.subr.mxu0 %v164_v9  ;;  %343 = vmatpush1.msra.mxu1 %v185_v22  ;;  %v165_v30 = vld [vmem:[#allocation5 + $0x380] sm:$0xff]  ;;  %v104_v31 = vld [vmem:[#allocation5 + $0x198] sm:$0xff]  ;;  %v103_v33 = vld [vmem:[#allocation5 + $0x190] sm:$0xff] }
  0x30   :  { %276 = vmatpush1.msra.mxu0 %v163_v10  ;;  %344 = vmatprep.subr.mxu1 %v176_v24  ;;  %v156_v32 = vld [vmem:[#allocation5 + $0x338] sm:$0xff]  ;;  %v155_v34 = vld [vmem:[#allocation5 + $0x330] sm:$0xff]  ;;  %v94_v35 = vld [vmem:[#allocation5 + $0x148] sm:$0xff] }
  0x31   :  { %277 = vmatprep.subr.mxu0 %v154_v11  ;;  %345 = vmatpush1.msra.mxu1 %v175_v26  ;;  %v146_v36 = vld [vmem:[#allocation5 + $0x2e8] sm:$0xff]  ;;  %v93_v37 = vld [vmem:[#allocation5 + $0x140] sm:$0xff]  ;;  %v84_v39 = vld [vmem:[#allocation5 + $0xf8] sm:$0xff] }
  0x32   :  { %278 = vmatpush1.msra.mxu0 %v153_v12  ;;  %346 = vmatprep.subr.mxu1 %v166_v28  ;;  %v145_v38 = vld [vmem:[#allocation5 + $0x2e0] sm:$0xff]  ;;  %v136_v40 = vld [vmem:[#allocation5 + $0x298] sm:$0xff]  ;;  %v83_v41 = vld [vmem:[#allocation5 + $0xf0] sm:$0xff] }
  0x33   :  { %279 = vmatprep.subr.mxu0 %v144_v13  ;;  %347 = vmatpush1.msra.mxu1 %v165_v30  ;;  %v135_v42 = vld [vmem:[#allocation5 + $0x290] sm:$0xff]  ;;  %v74_v43 = vld [vmem:[#allocation5 + $0xa8] sm:$0xff]  ;;  %v73_v45 = vld [vmem:[#allocation5 + $0xa0] sm:$0xff] }
  0x34   :  { %280 = vmatpush1.msra.mxu0 %v143_v15  ;;  %348 = vmatprep.subr.mxu1 %v156_v32  ;;  %v126_v44 = vld [vmem:[#allocation5 + $0x248] sm:$0xff]  ;;  %v125_v46 = vld [vmem:[#allocation5 + $0x240] sm:$0xff]  ;;  %v64_v47 = vld [vmem:[#allocation5 + $0x58] sm:$0xff] }
  0x35   :  { %281 = vmatprep.subr.mxu0 %v134_v18  ;;  %349 = vmatpush1.msra.mxu1 %v155_v34  ;;  %v116_v48 = vld [vmem:[#allocation5 + $0x1f8] sm:$0xff]  ;;  %v63_v49 = vld [vmem:[#allocation5 + $0x50] sm:$0xff]  ;;  %v54_v51 = vld [vmem:[#allocation5 + $0x8] sm:$0xff] }
  0x36   :  { %282 = vmatpush1.msra.mxu0 %v133_v20  ;;  %350 = vmatprep.subr.mxu1 %v146_v36  ;;  %v115_v50 = vld [vmem:[#allocation5 + $0x1f0] sm:$0xff]  ;;  %v106_v52 = vld [vmem:[#allocation5 + $0x1a8] sm:$0xff]  ;;  %v53_v53 = vld [vmem:[#allocation5] sm:$0xff] }
  0x37   :  { %283 = vmatprep.subr.mxu0 %v124_v23  ;;  %351 = vmatpush1.msra.mxu1 %v145_v38  ;;  %v105_v54 = vld [vmem:[#allocation5 + $0x1a0] sm:$0xff]  ;;  %v779_v55 = vld [vmem:[#allocation2] sm:$0xff]  ;;  %v207_v57 = vld [vmem:[#allocation5 + $0x4d0] sm:$0xff] }
  0x38   :  { %284 = vmatpush1.msra.mxu0 %v123_v25  ;;  %352 = vmatprep.subr.mxu1 %v136_v40  ;;  %v208_v56 = vld [vmem:[#allocation5 + $0x4d8] sm:$0xff]  ;;  %v198_v59 = vld [vmem:[#allocation5 + $0x488] sm:$0xff]  ;;  %v95_v60 = vld [vmem:[#allocation5 + $0x150] sm:$0xff] }
  0x39   :  { %285 = vmatprep.subr.mxu0 %v114_v27  ;;  %353 = vmatpush1.msra.mxu1 %v135_v42  ;;  %v96_v58 = vld [vmem:[#allocation5 + $0x158] sm:$0xff]  ;;  %v197_v61 = vld [vmem:[#allocation5 + $0x480] sm:$0xff]  ;;  %v86_v62 = vld [vmem:[#allocation5 + $0x108] sm:$0xff] }
  0x3a   :  { %286 = vmatpush1.msra.mxu0 %v113_v29  ;;  %354 = vmatprep.subr.mxu1 %v126_v44  ;;  %v188_v63 = vld [vmem:[#allocation5 + $0x438] sm:$0xff]  ;;  %v85_v1 = vld [vmem:[#allocation5 + $0x100] sm:$0xff]  ;;  %v187_v2 = vld [vmem:[#allocation5 + $0x430] sm:$0xff] }
  0x3b   :  { %287 = vmatprep.subr.mxu0 %v104_v31  ;;  %355 = vmatpush1.msra.mxu1 %v125_v46  ;;  %v76_v3 = vld [vmem:[#allocation5 + $0xb8] sm:$0xff]  ;;  %v178_v4 = vld [vmem:[#allocation5 + $0x3e8] sm:$0xff]  ;;  %v75_v5 = vld [vmem:[#allocation5 + $0xb0] sm:$0xff] }
  0x3c   :  { %288 = vmatpush1.msra.mxu0 %v103_v33  ;;  %356 = vmatprep.subr.mxu1 %v116_v48  ;;  %v177_v6 = vld [vmem:[#allocation5 + $0x3e0] sm:$0xff]  ;;  %v66_v7 = vld [vmem:[#allocation5 + $0x68] sm:$0xff]  ;;  %v168_v8 = vld [vmem:[#allocation5 + $0x398] sm:$0xff] }
  0x3d   :  { %289 = vmatprep.subr.mxu0 %v94_v35  ;;  %357 = vmatpush1.msra.mxu1 %v115_v50  ;;  %v65_v9 = vld [vmem:[#allocation5 + $0x60] sm:$0xff]  ;;  %v167_v10 = vld [vmem:[#allocation5 + $0x390] sm:$0xff]  ;;  %v56_v11 = vld [vmem:[#allocation5 + $0x18] sm:$0xff] }
  0x3e   :  { %290 = vmatpush1.msra.mxu0 %v93_v37  ;;  %358 = vmatprep.subr.mxu1 %v106_v52  ;;  %v158_v12 = vld [vmem:[#allocation5 + $0x348] sm:$0xff]  ;;  %v55_v13 = vld [vmem:[#allocation5 + $0x10] sm:$0xff]  ;;  %v157_v14 = vld [vmem:[#allocation5 + $0x340] sm:$0xff] }
  0x3f   :  { %291 = vmatprep.subr.mxu0 %v84_v39  ;;  %359 = vmatpush1.msra.mxu1 %v105_v54  ;;  %v210_v15 = vld [vmem:[#allocation5 + $0x4e8] sm:$0xff]  ;;  %v148_v16 = vld [vmem:[#allocation5 + $0x2f8] sm:$0xff]  ;;  %v147_v17 = vld [vmem:[#allocation5 + $0x2f0] sm:$0xff] }
  0x40   :  { %292 = vmatpush1.msra.mxu0 %v83_v41  ;;  %360 = vmatprep.subr.mxu1 %v96_v58  ;;  %v138_v18 = vld [vmem:[#allocation5 + $0x2a8] sm:$0xff]  ;;  %v209_v19 = vld [vmem:[#allocation5 + $0x4e0] sm:$0xff]  ;;  %v200_v21 = vld [vmem:[#allocation5 + $0x498] sm:$0xff] }
  0x41   :  { %293 = vmatprep.subr.mxu0 %v74_v43  ;;  %361 = vmatpush1.msra.mxu1 %v95_v60  ;;  %v137_v20 = vld [vmem:[#allocation5 + $0x2a0] sm:$0xff]  ;;  %v128_v22 = vld [vmem:[#allocation5 + $0x258] sm:$0xff]  ;;  %v199_v23 = vld [vmem:[#allocation5 + $0x490] sm:$0xff] }
  0x42   :  { %294 = vmatpush1.msra.mxu0 %v73_v45  ;;  %362 = vmatprep.subr.mxu1 %v86_v62  ;;  %v127_v24 = vld [vmem:[#allocation5 + $0x250] sm:$0xff]  ;;  %v190_v25 = vld [vmem:[#allocation5 + $0x448] sm:$0xff]  ;;  %v189_v27 = vld [vmem:[#allocation5 + $0x440] sm:$0xff] }
  0x43   :  { %295 = vmatprep.subr.mxu0 %v64_v47  ;;  %363 = vmatpush1.msra.mxu1 %v85_v1  ;;  %v118_v26 = vld [vmem:[#allocation5 + $0x208] sm:$0xff]  ;;  %v117_v28 = vld [vmem:[#allocation5 + $0x200] sm:$0xff]  ;;  %v180_v29 = vld [vmem:[#allocation5 + $0x3f8] sm:$0xff] }
  0x44   :  { %296 = vmatpush1.msra.mxu0 %v63_v49  ;;  %364 = vmatprep.subr.mxu1 %v76_v3  ;;  %v108_v30 = vld [vmem:[#allocation5 + $0x1b8] sm:$0xff]  ;;  %v179_v31 = vld [vmem:[#allocation5 + $0x3f0] sm:$0xff]  ;;  %v170_v33 = vld [vmem:[#allocation5 + $0x3a8] sm:$0xff] }
  0x45   :  { %297 = vmatprep.subr.mxu0 %v54_v51  ;;  %365 = vmatpush1.msra.mxu1 %v75_v5  ;;  %v107_v32 = vld [vmem:[#allocation5 + $0x1b0] sm:$0xff]  ;;  %v98_v34 = vld [vmem:[#allocation5 + $0x168] sm:$0xff]  ;;  %v169_v35 = vld [vmem:[#allocation5 + $0x3a0] sm:$0xff] }
  0x46   :  { %298 = vmatpush1.msra.mxu0 %v53_v53  ;;  %366 = vmatprep.subr.mxu1 %v66_v7  ;;  %v97_v36 = vld [vmem:[#allocation5 + $0x160] sm:$0xff]  ;;  %v160_v37 = vld [vmem:[#allocation5 + $0x358] sm:$0xff]  ;;  %v159_v39 = vld [vmem:[#allocation5 + $0x350] sm:$0xff] }
  0x47   :  { %332 = vmatmul.mubr.f32.vlgmr.msra.gmra.mxu0 %v779_v55  ;;  %409 = vmatprep.subr.mxu0 %v208_v56  ;;  %v88_v38 = vld [vmem:[#allocation5 + $0x118] sm:$0xff]  ;;  %v87_v40 = vld [vmem:[#allocation5 + $0x110] sm:$0xff]  ;;  %v150_v41 = vld [vmem:[#allocation5 + $0x308] sm:$0xff] }
  0x48   :  { %410 = vmatpush1.msra.mxu0 %v207_v57  ;;  %367 = vmatpush1.msra.mxu1 %v65_v9  ;;  %v78_v42 = vld [vmem:[#allocation5 + $0xc8] sm:$0xff]  ;;  %v149_v43 = vld [vmem:[#allocation5 + $0x300] sm:$0xff]  ;;  %v140_v45 = vld [vmem:[#allocation5 + $0x2b8] sm:$0xff] }
  0x49   :  { %411 = vmatprep.subr.mxu0 %v198_v59  ;;  %368 = vmatprep.subr.mxu1 %v56_v11  ;;  %v77_v44 = vld [vmem:[#allocation5 + $0xc0] sm:$0xff]  ;;  %v68_v46 = vld [vmem:[#allocation5 + $0x78] sm:$0xff]  ;;  %v139_v47 = vld [vmem:[#allocation5 + $0x2b0] sm:$0xff] }
  0x4a   :  { %412 = vmatpush1.msra.mxu0 %v197_v61  ;;  %369 = vmatpush1.msra.mxu1 %v55_v13  ;;  %v67_v48 = vld [vmem:[#allocation5 + $0x70] sm:$0xff]  ;;  %v130_v49 = vld [vmem:[#allocation5 + $0x268] sm:$0xff]  ;;  %v129_v51 = vld [vmem:[#allocation5 + $0x260] sm:$0xff] }
  0x4b   :  { %413 = vmatprep.subr.mxu0 %v188_v63  ;;  %480 = vmatprep.subr.mxu1 %v210_v15  ;;  %v58_v50 = vld [vmem:[#allocation5 + $0x28] sm:$0xff]  ;;  %v57_v52 = vld [vmem:[#allocation5 + $0x20] sm:$0xff]  ;;  %v120_v53 = vld [vmem:[#allocation5 + $0x218] sm:$0xff] }
  0x4c   :  { %414 = vmatpush1.msra.mxu0 %v187_v2  ;;  %403 = vmatmul.mubr.f32.vlgmr.msra.gmra.mxu1 %v779_v55  ;;  %v212_v54 = vld [vmem:[#allocation5 + $0x4f8] sm:$0xff]  ;;  %v211_v56 = vld [vmem:[#allocation5 + $0x4f0] sm:$0xff]  ;;  %v202_v58 = vld [vmem:[#allocation5 + $0x4a8] sm:$0xff] }
  0x4d   :  { %415 = vmatprep.subr.mxu0 %v178_v4  ;;  %473 = vmatprep.mubr.f32.mxu0 %v746_v0  ;;  %v119_v57 = vld [vmem:[#allocation5 + $0x210] sm:$0xff]  ;;  %v110_v59 = vld [vmem:[#allocation5 + $0x1c8] sm:$0xff]  ;;  %v201_v60 = vld [vmem:[#allocation5 + $0x4a0] sm:$0xff] }
  0x4e   :  { %416 = vmatpush1.msra.mxu0 %v177_v6  ;;  %481 = vmatpush1.msra.mxu1 %v209_v19  ;;  %v109_v61 = vld [vmem:[#allocation5 + $0x1c0] sm:$0xff]  ;;  %v192_v62 = vld [vmem:[#allocation5 + $0x458] sm:$0xff]  ;;  %v191_v1 = vld [vmem:[#allocation5 + $0x450] sm:$0xff] }
  0x4f   :  { %417 = vmatprep.subr.mxu0 %v168_v8  ;;  %482 = vmatprep.subr.mxu1 %v200_v21  ;;  %v100_v63 = vld [vmem:[#allocation5 + $0x178] sm:$0xff]  ;;  %v99_v2 = vld [vmem:[#allocation5 + $0x170] sm:$0xff]  ;;  %v182_v3 = vld [vmem:[#allocation5 + $0x408] sm:$0xff] }
  0x50   :  { %418 = vmatpush1.msra.mxu0 %v167_v10  ;;  %483 = vmatpush1.msra.mxu1 %v199_v23  ;;  %v90_v4 = vld [vmem:[#allocation5 + $0x128] sm:$0xff]  ;;  %v181_v5 = vld [vmem:[#allocation5 + $0x400] sm:$0xff]  ;;  %v172_v7 = vld [vmem:[#allocation5 + $0x3b8] sm:$0xff] }
  0x51   :  { %419 = vmatprep.subr.mxu0 %v158_v12  ;;  %484 = vmatprep.subr.mxu1 %v190_v25  ;;  %v89_v6 = vld [vmem:[#allocation5 + $0x120] sm:$0xff]  ;;  %v80_v8 = vld [vmem:[#allocation5 + $0xd8] sm:$0xff]  ;;  %v171_v9 = vld [vmem:[#allocation5 + $0x3b0] sm:$0xff] }
  0x52   :  { %420 = vmatpush1.msra.mxu0 %v157_v14  ;;  %485 = vmatpush1.msra.mxu1 %v189_v27  ;;  %v79_v10 = vld [vmem:[#allocation5 + $0xd0] sm:$0xff]  ;;  %v162_v11 = vld [vmem:[#allocation5 + $0x368] sm:$0xff]  ;;  %v161_v13 = vld [vmem:[#allocation5 + $0x360] sm:$0xff] }
  0x53   :  { %421 = vmatprep.subr.mxu0 %v148_v16  ;;  %486 = vmatprep.subr.mxu1 %v180_v29  ;;  %v70_v12 = vld [vmem:[#allocation5 + $0x88] sm:$0xff]  ;;  %v69_v14 = vld [vmem:[#allocation5 + $0x80] sm:$0xff]  ;;  %v152_v15 = vld [vmem:[#allocation5 + $0x318] sm:$0xff] }
  0x54   :  { %422 = vmatpush1.msra.mxu0 %v147_v17  ;;  %487 = vmatpush1.msra.mxu1 %v179_v31  ;;  %v60_v16 = vld [vmem:[#allocation5 + $0x38] sm:$0xff]  ;;  %v151_v17 = vld [vmem:[#allocation5 + $0x310] sm:$0xff]  ;;  %v142_v19 = vld [vmem:[#allocation5 + $0x2c8] sm:$0xff] }
  0x55   :  { %423 = vmatprep.subr.mxu0 %v138_v18  ;;  %488 = vmatprep.subr.mxu1 %v170_v33  ;;  %v59_v18 = vld [vmem:[#allocation5 + $0x30] sm:$0xff]  ;;  %v132_v21 = vld [vmem:[#allocation5 + $0x278] sm:$0xff]  ;;  %v122_v23 = vld [vmem:[#allocation5 + $0x228] sm:$0xff] }
  0x56   :  { %424 = vmatpush1.msra.mxu0 %v137_v20  ;;  %489 = vmatpush1.msra.mxu1 %v169_v35  ;;  %v141_v20 = vld [vmem:[#allocation5 + $0x2c0] sm:$0xff]  ;;  %v112_v25 = vld [vmem:[#allocation5 + $0x1d8] sm:$0xff]  ;;  %v102_v27 = vld [vmem:[#allocation5 + $0x188] sm:$0xff] }
  0x57   :  { %425 = vmatprep.subr.mxu0 %v128_v22  ;;  %490 = vmatprep.subr.mxu1 %v160_v37  ;;  %v131_v22 = vld [vmem:[#allocation5 + $0x270] sm:$0xff]  ;;  %v92_v29 = vld [vmem:[#allocation5 + $0x138] sm:$0xff]  ;;  %v82_v31 = vld [vmem:[#allocation5 + $0xe8] sm:$0xff] }
  0x58   :  { %426 = vmatpush1.msra.mxu0 %v127_v24  ;;  %491 = vmatpush1.msra.mxu1 %v159_v39  ;;  %v121_v24 = vld [vmem:[#allocation5 + $0x220] sm:$0xff]  ;;  %v72_v33 = vld [vmem:[#allocation5 + $0x98] sm:$0xff] }
  0x59   :  { %427 = vmatprep.subr.mxu0 %v118_v26  ;;  %492 = vmatprep.subr.mxu1 %v150_v41  ;;  %v111_v26 = vld [vmem:[#allocation5 + $0x1d0] sm:$0xff]  ;;  %v61_v35 = vld [vmem:[#allocation5 + $0x40] sm:$0xff] }
  0x5a   :  { %428 = vmatpush1.msra.mxu0 %v117_v28  ;;  %493 = vmatpush1.msra.mxu1 %v149_v43  ;;  %v101_v28 = vld [vmem:[#allocation5 + $0x180] sm:$0xff] }
  0x5b   :  { %429 = vmatprep.subr.mxu0 %v108_v30  ;;  %494 = vmatprep.subr.mxu1 %v140_v45  ;;  %v91_v30 = vld [vmem:[#allocation5 + $0x130] sm:$0xff]  ;;  %v213_v39 = vld [vmem:[#allocation7] sm:$0xff] }
  0x5c   :  { %430 = vmatpush1.msra.mxu0 %v107_v32  ;;  %495 = vmatpush1.msra.mxu1 %v139_v47  ;;  %v81_v32 = vld [vmem:[#allocation5 + $0xe0] sm:$0xff] }
  0x5d   :  { %431 = vmatprep.subr.mxu0 %v98_v34  ;;  %496 = vmatprep.subr.mxu1 %v130_v49  ;;  %v62_v34 = vld [vmem:[#allocation5 + $0x48] sm:$0xff] }
  0x5e   :  { %432 = vmatpush1.msra.mxu0 %v97_v36  ;;  %497 = vmatpush1.msra.mxu1 %v129_v51  ;;  %v217_v36 = vlaneseq }
  0x5f   :  { %433 = vmatprep.subr.mxu0 %v88_v38  ;;  %498 = vmatprep.subr.mxu1 %v120_v53 }
  0x60   :  { %434 = vmatpush1.msra.mxu0 %v87_v40  ;;  %499 = vmatpush1.msra.mxu1 %v119_v57  ;;  %v218_v37 = vshrl.u32 %v217_v36, 7 }
  0x61   :  { %435 = vmatprep.subr.mxu0 %v78_v42  ;;  %500 = vmatprep.subr.mxu1 %v110_v59 }
  0x62   :  { %436 = vmatpush1.msra.mxu0 %v77_v44  ;;  %501 = vmatpush1.msra.mxu1 %v109_v61  ;;  %v219_v38 = vsub.s32 0, %v218_v37  ;;  %v223_v40 = vsub.s32 1, %v218_v37  ;;  %v227_v47 = vsub.s32 2, %v218_v37 }
  0x63   :  { %437 = vmatprep.subr.mxu0 %v68_v46  ;;  %502 = vmatprep.subr.mxu1 %v100_v63  ;;  %v243_v63 = vsub.s32 6, %v218_v37 }
  0x64   :  { %438 = vmatpush1.msra.mxu0 %v67_v48  ;;  %503 = vmatpush1.msra.mxu1 %v99_v2  ;;  %v220_v41 = vrot.slane %v213_v39, %v219_v38  ;;  %v224_v42 = vrot.slane %v213_v39, %v223_v40  ;;  %v231_v48 = vsub.s32 3, %v218_v37  ;;  %v228_v49 = vrot.slane %v213_v39, %v227_v47 }
  0x65   :  { %439 = vmatprep.subr.mxu0 %v58_v50  ;;  %504 = vmatprep.subr.mxu1 %v90_v4  ;;  %v244_v2 = vrot.slane %v213_v39, %v243_v63 }
  0x66   :  { %440 = vmatpush1.msra.mxu0 %v57_v52  ;;  %505 = vmatpush1.msra.mxu1 %v89_v6  ;;  %v232_v50 = vrot.slane %v213_v39, %v231_v48 }
  0x67   :  { %474 = vmatmul.mubr.f32.vlgmr.msra.gmra.mxu0 %v779_v55  ;;  %551 = vmatprep.subr.mxu0 %v212_v54  ;;  %v235_v54 = vsub.s32 4, %v218_v37 }
  0x68   :  { %552 = vmatpush1.msra.mxu0 %v211_v56  ;;  %506 = vmatprep.subr.mxu1 %v80_v8  ;;  %v239_v56 = vsub.s32 5, %v218_v37  ;;  %v214_v8 = vld [vmem:[#allocation7 + $0x8] sm:$0x3] }
  0x69   :  { %553 = vmatprep.subr.mxu0 %v202_v58  ;;  %507 = vmatpush1.msra.mxu1 %v79_v10  ;;  %v236_v57 = vrot.slane %v213_v39, %v235_v54  ;;  %v256_v10 = vrot.slane %v214_v8, %v223_v40 }
  0x6a   :  { %554 = vmatpush1.msra.mxu0 %v201_v60  ;;  %508 = vmatprep.subr.mxu1 %v70_v12  ;;  %v240_v58 = vrot.slane %v213_v39, %v239_v56 }
  0x6b   :  { %555 = vmatprep.subr.mxu0 %v192_v62  ;;  %509 = vmatpush1.msra.mxu1 %v69_v14 }
  0x6c   :  { %556 = vmatpush1.msra.mxu0 %v191_v1  ;;  %510 = vmatprep.subr.mxu1 %v60_v16  ;;  %v247_v1 = vsub.s32 7, %v218_v37 }
  0x6d   :  { %557 = vmatprep.subr.mxu0 %v182_v3  ;;  %511 = vmatpush1.msra.mxu1 %v59_v18 }
  0x6e   :  { %558 = vmatpush1.msra.mxu0 %v181_v5  ;;  %544 = vmatprep.mubr.f32.mxu1 %v746_v0  ;;  %v248_v3 = vrot.slane %v213_v39, %v247_v1 }
  0x6f   :  { %559 = vmatprep.subr.mxu0 %v172_v7  ;;  %545 = vmatmul.mubr.f32.vlgmr.msra.gmra.mxu1 %v779_v55 }
  0x70   :  { %560 = vmatpush1.msra.mxu0 %v171_v9  ;;  %615 = vmatprep.mubr.f32.mxu0 %v746_v0  ;;  %v71_v0 = vld [vmem:[#allocation5 + $0x90] sm:$0xff]  ;;  %v252_v9 = vrot.slane %v214_v8, %v219_v38 }
  0x71   :  { %561 = vmatprep.subr.mxu0 %v162_v11 }
  0x72   :  { %562 = vmatpush1.msra.mxu0 %v161_v13 }
  0x73   :  { %563 = vmatprep.subr.mxu0 %v152_v15 }
  0x74   :  { %564 = vmatpush1.msra.mxu0 %v151_v17 }
  0x75   :  { %565 = vmatprep.subr.mxu0 %v142_v19 }
  0x76   :  { %566 = vmatpush1.msra.mxu0 %v141_v20 }
  0x77   :  { %567 = vmatprep.subr.mxu0 %v132_v21 }
  0x78   :  { %568 = vmatpush1.msra.mxu0 %v131_v22 }
  0x79   :  { %569 = vmatprep.subr.mxu0 %v122_v23 }
  0x7a   :  { %570 = vmatpush1.msra.mxu0 %v121_v24 }
  0x7b   :  { %571 = vmatprep.subr.mxu0 %v112_v25 }
  0x7c   :  { %572 = vmatpush1.msra.mxu0 %v111_v26 }
  0x7d   :  { %573 = vmatprep.subr.mxu0 %v102_v27 }
  0x7e   :  { %574 = vmatpush1.msra.mxu0 %v101_v28 }
  0x7f   :  { %575 = vmatprep.subr.mxu0 %v92_v29 }
  0x80   :  { %576 = vmatpush1.msra.mxu0 %v91_v30 }
  0x81   :  { %577 = vmatprep.subr.mxu0 %v82_v31 }
  0x82   :  { %578 = vmatpush1.msra.mxu0 %v81_v32 }
  0x83   :  { %579 = vmatprep.subr.mxu0 %v72_v33 }
  0x84   :  { %580 = vmatpush1.msra.mxu0 %v71_v0 }
  0x85   :  { %581 = vmatprep.subr.mxu0 %v62_v34 }
  0x86   :  { %582 = vmatpush1.msra.mxu0 %v61_v35 }
  0x87   :  { %616 = vmatmul.mubr.f32.vlgmr.msra.gmra.mxu0 %v779_v55 }
 0x107   :  { %v333_v43 = vpop.f32.mrf.mxu0 }
 0x108   :  { %v334_v44 = vadd.f32 %v333_v43, %v220_v41 }
 0x109   :  { %v335_v45 = vpop.f32.mrf.mxu0 }
 0x10a   :  { %622 = vst [vmem:[#allocation8] sm:$0xff] %v334_v44  ;;  %v336_v46 = vadd.f32 %v335_v45, %v224_v42 }
 0x10c   :  { %623 = vst [vmem:[#allocation8 + $0x8] sm:$0xff] %v336_v46  ;;  %v404_v51 = vpop.f32.mrf.mxu1 }
 0x10d   :  { %v405_v52 = vadd.f32 %v404_v51, %v228_v49 }
 0x10e   :  { %v406_v55 = vpop.f32.mrf.mxu1 }
 0x10f   :  { %624 = vst [vmem:[#allocation8 + $0x10] sm:$0xff] %v405_v52  ;;  %v407_v53 = vadd.f32 %v406_v55, %v232_v50 }
 0x111   :  { %625 = vst [vmem:[#allocation8 + $0x18] sm:$0xff] %v407_v53 }
 0x127   :  { %v475_v59 = vpop.f32.mrf.mxu0 }
 0x128   :  { %v476_v60 = vadd.f32 %v475_v59, %v236_v57 }
 0x129   :  { %v477_v61 = vpop.f32.mrf.mxu0 }
 0x12a   :  { %626 = vst [vmem:[#allocation8 + $0x20] sm:$0xff] %v476_v60  ;;  %v478_v62 = vadd.f32 %v477_v61, %v240_v58 }
 0x12c   :  { %627 = vst [vmem:[#allocation8 + $0x28] sm:$0xff] %v478_v62 }
 0x12f   :  { %v546_v4 = vpop.f32.mrf.mxu1 }
 0x130   :  { %v547_v5 = vadd.f32 %v546_v4, %v244_v2 }
 0x131   :  { %v548_v6 = vpop.f32.mrf.mxu1 }
 0x132   :  { %628 = vst [vmem:[#allocation8 + $0x30] sm:$0xff] %v547_v5  ;;  %v549_v7 = vadd.f32 %v548_v6, %v248_v3 }
 0x134   :  { %629 = vst [vmem:[#allocation8 + $0x38] sm:$0xff] %v549_v7 }
 0x147   :  { %v617_v11 = vpop.f32.mrf.mxu0 }
 0x148   :  { %v618_v12 = vadd.f32 %v617_v11, %v252_v9 }
 0x149   :  { %v619_v13 = vpop.f32.mrf.mxu0 }
 0x14a   :  { %630 = vst [vmem:[#allocation8 + $0x40] sm:$0xff] %v618_v12  ;;  %v620_v14 = vadd.f32 %v619_v13, %v256_v10 }
 0x14c   :  { %631 = vst [vmem:[#allocation8 + $0x48] sm:$0xff] %v620_v14 }
 0x14d   :  { %726 = shalt.err (!%p723_p5)
}
 0x14e   :  { %641 = dma.vmem_to_hbm [thread:$0]  %s639_s2, 1280, %s795_s3, [#allocation4]  }
 0x14f   :  { %739 = dma.done.wait [#allocation4], 1280  }
 0x150   :  { %740 = vsyncadd [#allocation4], 4294966016 }
 0x151   :  { %645 = vsyncpa [#allocation3], 1 }
 0x152   :  { %646 = vsyncpa [#allocation6], 1 }
 0x153   :  { %647 = vsyncpa [#allocation4], 1 }

</bundles_post_ra>
